<compile_context>
chip_gen: v5e
topology: v5e:2x2
jax: 0.10.0
libtpu: 0.0.40
codegen_flags: <defaults>
</compile_context>

<pallas_src>
import functools

import jax
import jax.numpy as jnp
from jax.experimental import pallas as pl
from jax.experimental.pallas import tpu as pltpu


def _round_up(a, b):
    return (a + b - 1) // b * b


def _enhanced_head_kernel(x_ref, gamma_ref, beta_ref,
                          w_in_ref, b_in_ref, w_out_ref, b_out_ref,
                          o_ref):
    # x tile for this grid step: (tm, d_in)
    x = x_ref[...].astype(jnp.float32)
    d_in = x.shape[-1]

    # ---- LayerNorm over the feature dim (single-pass stats, f32, eps=1e-5) ----
    inv_d = jnp.float32(1.0 / d_in)
    s1 = jnp.sum(x, axis=-1, keepdims=True)
    s2 = jnp.sum(x * x, axis=-1, keepdims=True)
    mean = s1 * inv_d
    var = jnp.maximum(s2 * inv_d - mean * mean, 0.0)
    inv = jax.lax.rsqrt(var + jnp.float32(1e-5))
    xn = (x - mean) * inv
    xn = xn * gamma_ref[...].astype(jnp.float32) + beta_ref[...].astype(jnp.float32)

    # ---- linear_in: h = xn @ W_in + b_in (MXU in the weights' stored dtype,
    #      f32 accumulation; resident weight tile is not upcast per step) ----
    w_in = w_in_ref[...]
    h = jnp.dot(xn.astype(w_in.dtype), w_in, preferred_element_type=jnp.float32)
    h = h + b_in_ref[...].astype(jnp.float32)

    # ---- exact GELU (erf form, matches torch.nn.GELU default), in f32 ----
    h = 0.5 * h * (1.0 + jax.lax.erf(h * jnp.float32(0.7071067811865476)))

    # ---- output linear: logits = h @ W_out + b_out (lane-dense padded N) ----
    w_out = w_out_ref[...]
    logits = jnp.dot(h.astype(w_out.dtype), w_out, preferred_element_type=jnp.float32)
    logits = logits + b_out_ref[...].astype(jnp.float32)

    o_ref[...] = logits.astype(o_ref.dtype)


@functools.partial(jax.jit, static_argnames=("block_m",))
def enhanced_head_base(x, gamma, beta, w_in, b_in, w_out, b_out, *, block_m=512):
    """x: [..., d_in] -> logits: [..., d_out]."""
    d_in = x.shape[-1]
    d_out = w_out.shape[-1]
    lead_shape = x.shape[:-1]

    x2 = x.reshape(-1, d_in)
    m = x2.shape[0]

    # Lane-dense output: pad N up to a multiple of 128 with zero weight columns.
    d_out_pad = _round_up(d_out, 128)
    if d_out_pad != d_out:
        w_out_p = jnp.pad(w_out, ((0, 0), (0, d_out_pad - d_out)))
        b_out_p = jnp.pad(b_out, (0, d_out_pad - d_out))
    else:
        w_out_p, b_out_p = w_out, b_out

    # ---- pick the row-tile size against a VMEM budget ------------------------
    x_bytes = jnp.dtype(x.dtype).itemsize
    w_bytes = jnp.dtype(w_in.dtype).itemsize
    out_bytes = jnp.dtype(x.dtype).itemsize
    # Resident weights/biases (single copy) + double-buffered x/out tiles +
    # f32 intermediates (xn, h) as a rough compute-scratch estimate.
    resident = w_bytes * (d_in * d_in + d_in * d_out_pad + 2 * d_in + d_out_pad)

    def _est(tm):
        tiles = 2 * tm * d_in * x_bytes + 2 * tm * d_out_pad * out_bytes
        scratch = 4 * tm * (2 * d_in + d_out_pad)  # f32 intermediates
        return resident + tiles + scratch

    budget = 48 * 1024 * 1024  # leave headroom on v7x's 64 MiB VMEM
    tm = max(16, min(block_m, _round_up(m, 16)))
    while tm > 16 and _est(tm) > budget:
        tm //= 2
    tm = max(16, _round_up(tm, 16))

    m_pad = _round_up(m, tm)
    if m_pad != m:
        x2 = jnp.pad(x2, ((0, m_pad - m), (0, 0)))

    grid = (m_pad // tm,)
    vmem_limit = int(min(100 * 1024 * 1024, max(32 * 1024 * 1024, _est(tm) * 2)))

    out = pl.pallas_call(
        _enhanced_head_kernel,
        out_shape=jax.ShapeDtypeStruct((m_pad, d_out_pad), x.dtype),
        grid_spec=pltpu.PrefetchScalarGridSpec(
            num_scalar_prefetch=0,
            grid=grid,
            in_specs=[
                pl.BlockSpec((tm, d_in), lambda i: (i, 0)),          # x rows
                pl.BlockSpec((1, d_in), lambda i: (0, 0)),           # gamma
                pl.BlockSpec((1, d_in), lambda i: (0, 0)),           # beta
                pl.BlockSpec((d_in, d_in), lambda i: (0, 0)),        # W_in (resident)
                pl.BlockSpec((1, d_in), lambda i: (0, 0)),           # b_in
                pl.BlockSpec((d_in, d_out_pad), lambda i: (0, 0)),   # W_out (resident)
                pl.BlockSpec((1, d_out_pad), lambda i: (0, 0)),      # b_out
            ],
            out_specs=pl.BlockSpec((tm, d_out_pad), lambda i: (i, 0)),
        ),
        compiler_params=pltpu.CompilerParams(
            dimension_semantics=("parallel",),
            vmem_limit_bytes=vmem_limit,
        ),
    )(x2, gamma.reshape(1, d_in), beta.reshape(1, d_in),
      w_in, b_in.reshape(1, d_in), w_out_p, b_out_p.reshape(1, d_out_pad))

    return out[:m, :d_out].reshape(*lead_shape, d_out)


def _reference(x, gamma, beta, w_in, b_in, w_out, b_out):
    xf = x.astype(jnp.float32)
    mean = jnp.mean(xf, axis=-1, keepdims=True)
    var = jnp.mean((xf - mean) ** 2, axis=-1, keepdims=True)
    xn = (xf - mean) * jax.lax.rsqrt(var + 1e-5) * gamma + beta
    h = xn @ w_in + b_in
    h = 0.5 * h * (1.0 + jax.lax.erf(h / jnp.sqrt(jnp.float32(2.0))))
    return h @ w_out + b_out


if __name__ == "__main__":
    # Small shapes implied by the forward: batch=2, seq=8, d_in=32, d_out=16.
    batch, seq, d_in, d_out = 2, 8, 32, 16

    key = jax.random.PRNGKey(0)
    kx, kwin, kwout = jax.random.split(key, 3)

    x = jax.random.normal(kx, (batch, seq, d_in), dtype=jnp.float32)

    # Deterministic synthetic parameters (module __init__ gives the shapes).
    gamma = jnp.ones((d_in,), jnp.float32)                       # LayerNorm weight
    beta = jnp.zeros((d_in,), jnp.float32)                       # LayerNorm bias
    # linear_in: (d_in -> d_in), init='relu' (He-style scale, synthetic values)
    w_in = jax.random.normal(kwin, (d_in, d_in), jnp.float32) * (2.0 / d_in) ** 0.5
    b_in = jnp.zeros((d_in,), jnp.float32)
    # linear: (d_in -> d_out), init='final' is zeros in UniFold; small random
    # values here so the test exercises the matmul path.
    w_out = jax.random.normal(kwout, (d_in, d_out), jnp.float32) * 0.02
    b_out = jnp.zeros((d_out,), jnp.float32)

    logits = enhanced_head_base(x, gamma, beta, w_in, b_in, w_out, b_out)
    logits = jax.block_until_ready(logits)

    ref = _reference(x, gamma, beta, w_in, b_in, w_out, b_out)
    assert logits.shape == (batch, seq, d_out)
    assert jnp.allclose(logits, ref, atol=1e-5, rtol=1e-5), "mismatch vs reference"

    print("KERNEL_OK")
</pallas_src>

<mosaic_0001>
module attributes {stable_mosaic.version = 11 : i64} {
  func.func @_enhanced_head_kernel(%arg0: i32, %arg1: memref<16x32xf32, #tpu.memory_space<vmem>>, %arg2: memref<1x32xf32, #tpu.memory_space<vmem>>, %arg3: memref<1x32xf32, #tpu.memory_space<vmem>>, %arg4: memref<32x32xf32, #tpu.memory_space<vmem>>, %arg5: memref<1x32xf32, #tpu.memory_space<vmem>>, %arg6: memref<32x128xf32, #tpu.memory_space<vmem>>, %arg7: memref<1x128xf32, #tpu.memory_space<vmem>>, %arg8: memref<16x128xf32, #tpu.memory_space<vmem>>) attributes {dimension_semantics = [#tpu.dimension_semantics<parallel>], iteration_bounds = array<i64: 1>, scalar_prefetch = 0 : i64, scratch_operands = 0 : i64, tpu.core_type = #tpu.core_type<tc>, window_params = [{transform_indices = @transform_0, window_bounds = array<i64: 16, 32>}, {pipeline_mode = #tpu.pipeline_mode<synchronous>, transform_indices = @transform_1, window_bounds = array<i64: 1, 32>}, {pipeline_mode = #tpu.pipeline_mode<synchronous>, transform_indices = @transform_2, window_bounds = array<i64: 1, 32>}, {pipeline_mode = #tpu.pipeline_mode<synchronous>, transform_indices = @transform_3, window_bounds = array<i64: 32, 32>}, {pipeline_mode = #tpu.pipeline_mode<synchronous>, transform_indices = @transform_4, window_bounds = array<i64: 1, 32>}, {pipeline_mode = #tpu.pipeline_mode<synchronous>, transform_indices = @transform_5, window_bounds = array<i64: 32, 128>}, {pipeline_mode = #tpu.pipeline_mode<synchronous>, transform_indices = @transform_6, window_bounds = array<i64: 1, 128>}, {transform_indices = @transform_7, window_bounds = array<i64: 16, 128>}]} {
    %c0 = arith.constant 0 : index
    %c0_0 = arith.constant 0 : index
    %0 = vector.load %arg1[%c0, %c0_0] : memref<16x32xf32, #tpu.memory_space<vmem>>, vector<16x32xf32>
    %cst = arith.constant dense<0.000000e+00> : vector<16xf32>
    %1 = vector.multi_reduction <add>, %0, %cst [1] : vector<16x32xf32> to vector<16xf32>
    %2 = vector.shape_cast %1 : vector<16xf32> to vector<16x1xf32>
    %3 = arith.mulf %0, %0 : vector<16x32xf32>
    %cst_1 = arith.constant dense<0.000000e+00> : vector<16xf32>
    %4 = vector.multi_reduction <add>, %3, %cst_1 [1] : vector<16x32xf32> to vector<16xf32>
    %5 = vector.shape_cast %4 : vector<16xf32> to vector<16x1xf32>
    %cst_2 = arith.constant 3.125000e-02 : f32
    %6 = vector.broadcast %cst_2 : f32 to vector<16x1xf32>
    %7 = arith.mulf %2, %6 : vector<16x1xf32>
    %cst_3 = arith.constant 3.125000e-02 : f32
    %8 = vector.broadcast %cst_3 : f32 to vector<16x1xf32>
    %9 = arith.mulf %5, %8 : vector<16x1xf32>
    %10 = arith.mulf %7, %7 : vector<16x1xf32>
    %11 = arith.subf %9, %10 : vector<16x1xf32>
    %cst_4 = arith.constant 0.000000e+00 : f32
    %12 = vector.broadcast %cst_4 : f32 to vector<16x1xf32>
    %13 = arith.maximumf %11, %12 : vector<16x1xf32>
    %cst_5 = arith.constant 9.99999974E-6 : f32
    %14 = vector.broadcast %cst_5 : f32 to vector<16x1xf32>
    %15 = arith.addf %13, %14 : vector<16x1xf32>
    %16 = math.rsqrt %15 : vector<16x1xf32>
    %17 = vector.broadcast %7 : vector<16x1xf32> to vector<16x32xf32>
    %18 = arith.subf %0, %17 : vector<16x32xf32>
    %19 = vector.broadcast %16 : vector<16x1xf32> to vector<16x32xf32>
    %20 = arith.mulf %18, %19 : vector<16x32xf32>
    %c0_6 = arith.constant 0 : index
    %c0_7 = arith.constant 0 : index
    %21 = vector.load %arg2[%c0_6, %c0_7] : memref<1x32xf32, #tpu.memory_space<vmem>>, vector<1x32xf32>
    %22 = vector.broadcast %21 : vector<1x32xf32> to vector<16x32xf32>
    %23 = arith.mulf %20, %22 : vector<16x32xf32>
    %c0_8 = arith.constant 0 : index
    %c0_9 = arith.constant 0 : index
    %24 = vector.load %arg3[%c0_8, %c0_9] : memref<1x32xf32, #tpu.memory_space<vmem>>, vector<1x32xf32>
    %25 = vector.broadcast %24 : vector<1x32xf32> to vector<16x32xf32>
    %26 = arith.addf %23, %25 : vector<16x32xf32>
    %c0_10 = arith.constant 0 : index
    %c0_11 = arith.constant 0 : index
    %27 = vector.load %arg4[%c0_10, %c0_11] : memref<32x32xf32, #tpu.memory_space<vmem>>, vector<32x32xf32>
    %cst_12 = arith.constant dense<0.000000e+00> : vector<16x32xf32>
    %28 = tpu.matmul %26, %27, %cst_12 {dimension_numbers = #tpu.dot_dimension_numbers<[1], [0], [0], [1], [0, 0, 1, 1], [], []>} : vector<16x32xf32>, vector<32x32xf32>, vector<16x32xf32> -> vector<16x32xf32>
    %c0_13 = arith.constant 0 : index
    %c0_14 = arith.constant 0 : index
    %29 = vector.load %arg5[%c0_13, %c0_14] : memref<1x32xf32, #tpu.memory_space<vmem>>, vector<1x32xf32>
    %30 = vector.broadcast %29 : vector<1x32xf32> to vector<16x32xf32>
    %31 = arith.addf %28, %30 : vector<16x32xf32>
    %cst_15 = arith.constant 5.000000e-01 : f32
    %32 = vector.broadcast %cst_15 : f32 to vector<16x32xf32>
    %33 = arith.mulf %32, %31 : vector<16x32xf32>
    %cst_16 = arith.constant 0.707106769 : f32
    %34 = vector.broadcast %cst_16 : f32 to vector<16x32xf32>
    %35 = arith.mulf %31, %34 : vector<16x32xf32>
    %36 = math.erf %35 : vector<16x32xf32>
    %cst_17 = arith.constant 1.000000e+00 : f32
    %37 = vector.broadcast %cst_17 : f32 to vector<16x32xf32>
    %38 = arith.addf %37, %36 : vector<16x32xf32>
    %39 = arith.mulf %33, %38 : vector<16x32xf32>
    %c0_18 = arith.constant 0 : index
    %c0_19 = arith.constant 0 : index
    %40 = vector.load %arg6[%c0_18, %c0_19] : memref<32x128xf32, #tpu.memory_space<vmem>>, vector<32x128xf32>
    %cst_20 = arith.constant dense<0.000000e+00> : vector<16x128xf32>
    %41 = tpu.matmul %39, %40, %cst_20 {dimension_numbers = #tpu.dot_dimension_numbers<[1], [0], [0], [1], [0, 0, 1, 1], [], []>} : vector<16x32xf32>, vector<32x128xf32>, vector<16x128xf32> -> vector<16x128xf32>
    %c0_21 = arith.constant 0 : index
    %c0_22 = arith.constant 0 : index
    %42 = vector.load %arg7[%c0_21, %c0_22] : memref<1x128xf32, #tpu.memory_space<vmem>>, vector<1x128xf32>
    %43 = vector.broadcast %42 : vector<1x128xf32> to vector<16x128xf32>
    %44 = arith.addf %41, %43 : vector<16x128xf32>
    %c0_23 = arith.constant 0 : index
    %c0_24 = arith.constant 0 : index
    %45 = vector.load %arg8[%c0_23, %c0_24] : memref<16x128xf32, #tpu.memory_space<vmem>>, vector<16x128xf32>
    tpu.vector_store %arg8[%c0_23, %c0_24], %44 {strides = array<i32>} : memref<16x128xf32, #tpu.memory_space<vmem>>, vector<16x128xf32>,
    return
  }
  func.func @transform_0(%arg0: i32) -> (i32, i32) {
    %c0_i32 = arith.constant 0 : i32
    %c0_i32_0 = arith.constant 0 : i32
    return %arg0, %c0_i32 : i32, i32
  }
  func.func @transform_1(%arg0: i32) -> (i32, i32) {
    %c0_i32 = arith.constant 0 : i32
    %c0_i32_0 = arith.constant 0 : i32
    %c0_i32_1 = arith.constant 0 : i32
    return %c0_i32, %c0_i32_0 : i32, i32
  }
  func.func @transform_2(%arg0: i32) -> (i32, i32) {
    %c0_i32 = arith.constant 0 : i32
    %c0_i32_0 = arith.constant 0 : i32
    %c0_i32_1 = arith.constant 0 : i32
    return %c0_i32, %c0_i32_0 : i32, i32
  }
  func.func @transform_3(%arg0: i32) -> (i32, i32) {
    %c0_i32 = arith.constant 0 : i32
    %c0_i32_0 = arith.constant 0 : i32
    %c0_i32_1 = arith.constant 0 : i32
    return %c0_i32, %c0_i32_0 : i32, i32
  }
  func.func @transform_4(%arg0: i32) -> (i32, i32) {
    %c0_i32 = arith.constant 0 : i32
    %c0_i32_0 = arith.constant 0 : i32
    %c0_i32_1 = arith.constant 0 : i32
    return %c0_i32, %c0_i32_0 : i32, i32
  }
  func.func @transform_5(%arg0: i32) -> (i32, i32) {
    %c0_i32 = arith.constant 0 : i32
    %c0_i32_0 = arith.constant 0 : i32
    %c0_i32_1 = arith.constant 0 : i32
    return %c0_i32, %c0_i32_0 : i32, i32
  }
  func.func @transform_6(%arg0: i32) -> (i32, i32) {
    %c0_i32 = arith.constant 0 : i32
    %c0_i32_0 = arith.constant 0 : i32
    %c0_i32_1 = arith.constant 0 : i32
    return %c0_i32, %c0_i32_0 : i32, i32
  }
  func.func @transform_7(%arg0: i32) -> (i32, i32) {
    %c0_i32 = arith.constant 0 : i32
    %c0_i32_0 = arith.constant 0 : i32
    return %arg0, %c0_i32 : i32, i32
  }
}

</mosaic_0001>

<bundles_post_ra>
// kernel: enhanced_head_base.1
= control target key start
LH: loop header
LB: loop body
LE: loop exit
PB: predicated region body
PF: predicated region fallthrough
CT: control target
= control target key end

     0   :  { %vm28_vm0 = vcmask 261120   ;;  %s411_s0 = inlined_call_operand.vmem [shape: f32[16,32], index: 0, kind: input, shape index: {}]   ;;  %s412_s1 = inlined_call_operand.vmem [shape: f32[1,32], index: 1, kind: input, shape index: {}]   ;;  %s413_s2 = inlined_call_operand.vmem [shape: f32[1,32], index: 2, kind: input, shape index: {}]   ;;  %s414_s4 = inlined_call_operand.vmem [shape: f32[1,32], index: 4, kind: input, shape index: {}]   ;;  %s415_s3 = inlined_call_operand.vmem [shape: f32[32,32], index: 3, kind: input, shape index: {}]   ;;  %s416_s6 = inlined_call_operand.vmem [shape: f32[1,128], index: 6, kind: input, shape index: {}]   ;;  %s417_s5 = inlined_call_operand.vmem [shape: f32[32,128], index: 5, kind: input, shape index: {}]   ;;  %s418_s7 = inlined_call_operand.vmem [shape: f32[16,128], index: 7, kind: output, shape index: {}]  }
   0x1   :  { %v328_v0 = vld [vmem:[%s411_s0 + $0x8] sm:$0xff]  ;;  %v333_v1 = vld [vmem:[%s411_s0] sm:$0xff]  ;;  %v94_v10 = vld [vmem:[%s415_s3 + $0x18] sm:$0xff] }
   0x2   :  { %v32_v2 = vsel %vm28_vm0, %v328_v0, 0.0  ;;  %v29_v3 = vsel %vm28_vm0, %v333_v1, 0.0  ;;  %v36_v4 = vmul.f32 %v328_v0, %v328_v0  ;;  %v35_v5 = vmul.f32 %v333_v1, %v333_v1  ;;  %v93_v11 = vld [vmem:[%s415_s3 + $0x10] sm:$0xff]  ;;  %117 = vmatpush.msra.mxu0 %v94_v10  ;;  %265 = vmatpush.msra.mxu2 %v94_v10  ;;  %v92_v13 = vld [vmem:[%s415_s3 + $0x8] sm:$0xff]  ;;  %v91_v15 = vld [vmem:[%s415_s3] sm:$0xff] }
   0x3   :  { %33 = vadd.xlane.f32.xlu0 %v32_v2  ;;  %30 = vadd.xlane.f32.xlu1 %v29_v3  ;;  %v273_v41 = vld [vmem:[%s412_s1] ss:$0 sm:$0xff] }
   0x4   :  { %v40_v6 = vsel %vm28_vm0, %v36_v4, 0.0  ;;  %v37_v7 = vsel %vm28_vm0, %v35_v5, 0.0  ;;  %118 = vmatpush.msra.mxu0 %v93_v11  ;;  %266 = vmatpush.msra.mxu2 %v93_v11  ;;  %v274_v45 = vld [vmem:[%s413_s2] ss:$0 sm:$0xff] }
   0x5   :  { %v275_v52 = vld [vmem:[%s414_s4] ss:$0 sm:$0xff] }
   0x6   :  { %119 = vmatpush.msra.mxu0 %v92_v13  ;;  %267 = vmatpush.msra.mxu2 %v92_v13  ;;  %v218_v13 = vld [vmem:[%s417_s5 + $0x10] sm:$0xff] }
   0x8   :  { %120 = vmatpush.msra.mxu0 %v91_v15  ;;  %268 = vmatpush.msra.mxu2 %v91_v15 }
   0xb   :  { %41 = vadd.xlane.f32.xlu0 %v40_v6  ;;  %38 = vadd.xlane.f32.xlu1 %v37_v7 }
  0x76   :  { %v34_v8 = vpop.xlane.xlu0 %33  ;;  %v31_v9 = vpop.xlane.xlu1 %30 }
  0x77   :  { %v43_v12 = vmul.f32 0.03125, %v31_v9  ;;  %v44_v14 = vmul.f32 0.03125, %v34_v8  ;;  %v219_v9 = vld [vmem:[%s417_s5 + $0x18] sm:$0xff] }
  0x78   :  { %242 = vmatpush.msra.mxu1 %v219_v9  ;;  %269 = vmatpush.msra.mxu3 %v219_v9 }
  0x79   :  { %v47_v16 = vmul.f32 %v43_v12, %v43_v12  ;;  %v48_v19 = vmul.f32 %v44_v14, %v44_v14  ;;  %v76_v39 = vsub.f32 %v328_v0, %v44_v14  ;;  %v75_v42 = vsub.f32 %v333_v1, %v43_v12 }
  0x7a   :  { %243 = vmatpush.msra.mxu1 %v218_v13  ;;  %270 = vmatpush.msra.mxu3 %v218_v13 }
  0x7e   :  { %v42_v17 = vpop.xlane.xlu0 %41  ;;  %v39_v18 = vpop.xlane.xlu1 %38 }
  0x7f   :  { %v46_v20 = vmul.f32 0.03125, %v42_v17  ;;  %v45_v21 = vmul.f32 0.03125, %v39_v18  ;;  %v217_v18 = vld [vmem:[%s417_s5 + $0x8] sm:$0xff] }
  0x80   :  { %244 = vmatpush.msra.mxu1 %v217_v18  ;;  %271 = vmatpush.msra.mxu3 %v217_v18 }
  0x81   :  { %v50_v22 = vsub.f32 %v46_v20, %v48_v19  ;;  %v49_v23 = vsub.f32 %v45_v21, %v47_v16  ;;  %v216_v19 = vld [vmem:[%s417_s5] sm:$0xff] }
  0x82   :  { %245 = vmatpush.msra.mxu1 %v216_v19  ;;  %272 = vmatpush.msra.mxu3 %v216_v19 }
  0x83   :  { %v52_v24 = vmax.f32 %v50_v22, 0.0  ;;  %v51_v25 = vmax.f32 %v49_v23, 0.0 }
  0x85   :  { %v54_v26 = vadd.f32 1e-05, %v52_v24  ;;  %v53_v27 = vadd.f32 1e-05, %v51_v25 }
  0x87   :  { %277 = vrsqrt.f32 %v54_v26  ;;  %vm61_vm2 = vweird.f32 %v53_v27  ;;  %vm71_vm4 = vweird.f32 %v54_v26 }
  0x88   :  { %279 = vrsqrt.f32 %v53_v27 }
  0x8d   :  { %v278_v28 = vpop.eup %277 }
  0x8e   :  { %v280_v29 = vpop.eup %279  ;;  %v66_v30 = vmul.f32 %v278_v28, %v54_v26  ;;  %vm72_vm1 = vweird.f32 %v278_v28 }
  0x8f   :  { %v56_v31 = vmul.f32 %v280_v29, %v53_v27  ;;  %vm62_vm3 = vweird.f32 %v280_v29  ;;  %vm73_vm5 = vmor %vm71_vm4, %vm72_vm1 }
  0x90   :  { %v67_v32 = vmul.f32 %v278_v28, %v66_v30  ;;  %vm63_vm6 = vmor %vm61_vm2, %vm62_vm3 }
  0x91   :  { %v57_v33 = vmul.f32 %v280_v29, %v56_v31 }
  0x92   :  { %v68_v34 = vmul.f32 0.5, %v67_v32 }
  0x93   :  { %v58_v35 = vmul.f32 0.5, %v57_v33 }
  0x94   :  { %v69_v36 = vsub.f32 1.5, %v68_v34 }
  0x95   :  { %v59_v37 = vsub.f32 1.5, %v58_v35 }
  0x96   :  { %v70_v38 = vmul.f32 %v278_v28, %v69_v36 }
  0x97   :  { %v60_v40 = vmul.f32 %v280_v29, %v59_v37 }
  0x98   :  { %v74_v43 = vsel %vm73_vm5, %v278_v28, %v70_v38 }
  0x99   :  { %v64_v44 = vsel %vm63_vm6, %v280_v29, %v60_v40  ;;  %v78_v46 = vmul.f32 %v76_v39, %v74_v43 }
  0x9a   :  { %v77_v47 = vmul.f32 %v75_v42, %v64_v44 }
  0x9b   :  { %v84_v48 = vmul.f32 %v273_v41, %v78_v46 }
  0x9c   :  { %v83_v49 = vmul.f32 %v273_v41, %v77_v47 }
  0x9d   :  { %v90_v50 = vadd.f32 %v274_v45, %v84_v48 }
  0x9e   :  { %v89_v51 = vadd.f32 %v274_v45, %v83_v49 }
  0x9f   :  { %260 = vmatmul.msk.f32.vlgmr.msra.gmra.mxu2 %vm28_vm0, %v90_v50 }
  0xa0   :  { %259 = vmatmul.msk.f32.vlgmr.msra.gmra.mxu0 %vm28_vm0, %v89_v51 }
 0x11d   :  { %v122_v53 = vpop.f32.mrf.mxu0 }
 0x11e   :  { %v370_v54 = vadd.f32 %v275_v52, %v122_v53 }
 0x120   :  { %v373_v55 = vmul.f32 0.70710677, %v370_v54 }
 0x122   :  { %v132_v56 = vmul.f32 %v373_v55, %v373_v55  ;;  %v125_v57 = vpop.f32.mrf.mxu2 }
 0x123   :  { %v377_v58 = vadd.f32 %v275_v52, %v125_v57 }
 0x124   :  { %v133_v59 = vmin.f32 %v132_v56, 16.0 }
 0x125   :  { %v380_v60 = vmul.f32 0.70710677, %v377_v58 }
 0x126   :  { %v134_v61 = vmul.f32 2.1237322e-06, %v133_v59  ;;  %v145_v62 = vmul.f32 3.8918573e-05, %v133_v59 }
 0x127   :  { %v172_v63 = vmul.f32 %v380_v60, %v380_v60 }
 0x128   :  { %v135_v0 = vadd.f32 0.00028619796, %v134_v61  ;;  %v146_v1 = vadd.f32 0.001143296, %v145_v62 }
 0x129   :  { %v173_v2 = vmin.f32 %v172_v63, 16.0 }
 0x12a   :  { %v136_v3 = vmul.f32 %v135_v0, %v133_v59  ;;  %v147_v4 = vmul.f32 %v146_v1, %v133_v59 }
 0x12b   :  { %v174_v5 = vmul.f32 2.1237322e-06, %v173_v2  ;;  %v185_v6 = vmul.f32 3.8918573e-05, %v173_v2 }
 0x12c   :  { %v137_v7 = vadd.f32 0.0036580483, %v136_v3  ;;  %v148_v8 = vadd.f32 0.014752088, %v147_v4 }
 0x12d   :  { %v175_v10 = vadd.f32 0.00028619796, %v174_v5  ;;  %v186_v11 = vadd.f32 0.001143296, %v185_v6  ;;  %v128_v5 = vmul.f32 0.5, %v370_v54 }
 0x12e   :  { %v149_v12 = vmul.f32 %v148_v8, %v133_v59  ;;  %v138_v16 = vmul.f32 %v137_v7, %v133_v59 }
 0x12f   :  { %v176_v14 = vmul.f32 %v175_v10, %v173_v2  ;;  %v187_v15 = vmul.f32 %v186_v11, %v173_v2  ;;  %v129_v11 = vmul.f32 0.5, %v377_v58 }
 0x130   :  { %v150_v17 = vadd.f32 0.112945676, %v149_v12  ;;  %v139_v24 = vadd.f32 0.05243302, %v138_v16 }
 0x131   :  { %v177_v20 = vadd.f32 0.0036580483, %v176_v14  ;;  %v188_v21 = vadd.f32 0.014752088, %v187_v15 }
 0x132   :  { %v151_v22 = vmul.f32 %v150_v17, %v133_v59  ;;  %v140_v30 = vmul.f32 %v139_v24, %v133_v59 }
 0x133   :  { %v189_v23 = vmul.f32 %v188_v21, %v173_v2  ;;  %v178_v26 = vmul.f32 %v177_v20, %v173_v2 }
 0x134   :  { %v152_v25 = vadd.f32 0.4994258, %v151_v22  ;;  %v141_v35 = vadd.f32 0.18741608, %v140_v30 }
 0x135   :  { %v190_v27 = vadd.f32 0.112945676, %v189_v23  ;;  %v179_v32 = vadd.f32 0.05243302, %v178_v26 }
 0x136   :  { %v153_v28 = vmul.f32 %v152_v25, %v133_v59  ;;  %v142_v39 = vmul.f32 %v141_v35, %v133_v59 }
 0x137   :  { %v191_v29 = vmul.f32 %v190_v27, %v173_v2  ;;  %v180_v36 = vmul.f32 %v179_v32, %v173_v2 }
 0x138   :  { %v154_v31 = vadd.f32 1.0, %v153_v28  ;;  %v143_v43 = vadd.f32 1.1283791, %v142_v39 }
 0x139   :  { %v192_v33 = vadd.f32 0.4994258, %v191_v29  ;;  %v181_v41 = vadd.f32 0.18741608, %v180_v36 }
 0x13a   :  { %281 = vrcp.f32 %v154_v31  ;;  %v166_v44 = vand.u32 2147483648, %v154_v31  ;;  %v164_v47 = vand.u32 2147483647, %v154_v31  ;;  %vm160_vm8 = vweird.f32 %v154_v31 }
 0x13b   :  { %v193_v34 = vmul.f32 %v192_v33, %v173_v2  ;;  %v182_v48 = vmul.f32 %v181_v41, %v173_v2  ;;  %v144_v51 = vmul.f32 %v143_v43, %v373_v55 }
 0x13c   :  { %v167_v52 = vor.u32 1.1754944e-38, %v166_v44  ;;  %vm165_vm10 = vcmp.eq.f32.partialorder %v164_v47, 8.507059e+37 }
 0x13d   :  { %v194_v37 = vadd.f32 1.0, %v193_v34  ;;  %v183_v57 = vadd.f32 1.1283791, %v182_v48 }
 0x13f   :  { %283 = vrcp.f32 %v194_v37  ;;  %v206_v59 = vand.u32 2147483648, %v194_v37  ;;  %v204_v63 = vand.u32 2147483647, %v194_v37  ;;  %vm200_vm12 = vweird.f32 %v194_v37 }
 0x140   :  { %v282_v38 = vpop.eup %281  ;;  %v184_v4 = vmul.f32 %v183_v57, %v380_v60  ;;  %v276_v60 = vld [vmem:[%s416_s6] ss:$0 sm:$0xff] }
 0x141   :  { %v156_v40 = vmul.f32 %v282_v38, %v154_v31  ;;  %vm161_vm7 = vweird.f32 %v282_v38  ;;  %v207_v2 = vor.u32 1.1754944e-38, %v206_v59  ;;  %vm205_vm14 = vcmp.eq.f32.partialorder %v204_v63, 8.507059e+37 }
 0x142   :  { %vm162_vm9 = vmor %vm160_vm8, %vm161_vm7 }
 0x143   :  { %v157_v42 = vsub.f32 1.0, %v156_v40 }
 0x145   :  { %v284_v45 = vpop.eup %283  ;;  %v158_v46 = vmul.f32 %v282_v38, %v157_v42 }
 0x146   :  { %v196_v49 = vmul.f32 %v284_v45, %v194_v37  ;;  %vm201_vm11 = vweird.f32 %v284_v45 }
 0x147   :  { %v159_v50 = vadd.f32 %v282_v38, %v158_v46  ;;  %vm202_vm13 = vmor %vm200_vm12, %vm201_vm11 }
 0x148   :  { %v197_v53 = vsub.f32 1.0, %v196_v49 }
 0x149   :  { %v163_v56 = vsel %vm162_vm9, %v282_v38, %v159_v50 }
 0x14a   :  { %v168_v61 = vsel %vm165_vm10, %v167_v52, %v163_v56  ;;  %v198_v62 = vmul.f32 %v284_v45, %v197_v53 }
 0x14b   :  { %v169_v0 = vmul.f32 %v168_v61, %v144_v51 }
 0x14c   :  { %v199_v1 = vadd.f32 %v284_v45, %v198_v62 }
 0x14d   :  { %v261_v3 = vclamps-f32 %v169_v0, 1.0 }
 0x14e   :  { %v203_v55 = vsel %vm202_vm13, %v284_v45, %v199_v1 }
 0x14f   :  { %v208_v6 = vsel %vm205_vm14, %v207_v2, %v203_v55  ;;  %v212_v7 = vadd.f32 1.0, %v261_v3 }
 0x150   :  { %v209_v8 = vmul.f32 %v208_v6, %v184_v4 }
 0x151   :  { %v214_v9 = vmul.f32 %v212_v7, %v128_v5 }
 0x152   :  { %v262_v10 = vclamps-f32 %v209_v8, 1.0 }
 0x153   :  { %263 = vmatmul.msk.f32.vlgmr.msra.gmra.mxu1 %vm28_vm0, %v214_v9 }
 0x154   :  { %v213_v12 = vadd.f32 1.0, %v262_v10 }
 0x156   :  { %v215_v13 = vmul.f32 %v213_v12, %v129_v11 }
 0x158   :  { %264 = vmatmul.msk.f32.vlgmr.msra.gmra.mxu3 %vm28_vm0, %v215_v13 }
 0x1d0   :  { %v247_v14 = vpop.f32.mrf.mxu1 }
 0x1d1   :  { %v248_v15 = vadd.f32 %v276_v60, %v247_v14 }
 0x1d3   :  { %253 = vst [vmem:[%s418_s7] sm:$0xff] %v248_v15 }
 0x1db   :  { %v250_v54 = vpop.f32.mrf.mxu3 }
 0x1dc   :  { %v251_v16 = vadd.f32 %v276_v60, %v250_v54 }
 0x1de   :  { %254 = vst [vmem:[%s418_s7 + $0x8] sm:$0xff] %v251_v16 }

</bundles_post_ra>
